<compile_context>
chip_gen: v7x
topology: tpu7x:2x2x1
jax: 0.10.0
libtpu: 0.0.40
codegen_flags: <defaults>
</compile_context>

<pallas_src>
import functools

import jax
import jax.numpy as jnp
from jax.experimental import pallas as pl
from jax.experimental.pallas import tpu as pltpu

_EPS = 1e-5
_LANE = 128
_TARGET_BLOCK_BYTES = 4 * 1024 * 1024    # ~4 MiB blocks amortize per-step overhead
_MAX_ROWBLOCK_BYTES = 8 * 1024 * 1024    # ceiling for the single-pass (full-HW) path
_VMEM_LIMIT_BYTES = 48 * 1024 * 1024     # 4 resident buffers stay well under this


def _round_up(x, m):
    return ((x + m - 1) // m) * m


def _sublane(dtype):
    # f32 -> 8, bf16 -> 16, int8/fp8 -> 32 (packed sublanes per vreg).
    return 32 // jnp.dtype(dtype).itemsize


# --------------------------------------------------------------------------- #
# Fast path: each block holds whole rows (full HW) -> single-pass stats.
# --------------------------------------------------------------------------- #
def _adain_rows_kernel(x_ref, fb_ref, o_ref, *, inv_hw):
    # x_ref: (RT, HW); rows are flattened (n, c) pairs.
    x = x_ref[...].astype(jnp.float32)
    s = jnp.sum(x, axis=-1, keepdims=True)
    sq = jnp.sum(x * x, axis=-1, keepdims=True)
    mean = s * inv_hw
    # Biased variance; clamp tiny negatives from cancellation.
    var = jnp.maximum(sq * inv_hw - mean * mean, 0.0)

    fb = fb_ref[...].astype(jnp.float32)             # (RT, 2) = [factor, bias]
    scale = fb[:, 0:1] * jax.lax.rsqrt(var + _EPS)
    shift = fb[:, 1:2] - mean * scale
    # NOTE: ragged (out-of-bounds) rows of the last grid step contain garbage and
    # may produce NaNs here; Pallas drops their output rows, so this is harmless.
    o_ref[...] = (x * scale + shift).astype(o_ref.dtype)


# --------------------------------------------------------------------------- #
# Large-image path: HW-split reduction (stats pass) + elementwise apply pass.
# --------------------------------------------------------------------------- #
def _adain_stats_kernel(x_ref, fb_ref, scale_ref, shift_ref, sum_ref, sq_ref,
                        *, hw, ht, inv_hw):
    k = pl.program_id(1)

    @pl.when(k == 0)
    def _init():
        sum_ref[...] = jnp.zeros_like(sum_ref)
        sq_ref[...] = jnp.zeros_like(sq_ref)

    x = x_ref[...].astype(jnp.float32)               # (RT, HT)
    if hw % ht != 0:
        # Mask the ragged HW tail so it does not pollute the sums.
        col = k * ht + jax.lax.broadcasted_iota(jnp.int32, x.shape, 1)
        x = jnp.where(col < hw, x, 0.0)
    sum_ref[...] += jnp.sum(x, axis=-1, keepdims=True)
    sq_ref[...] += jnp.sum(x * x, axis=-1, keepdims=True)

    @pl.when(k == pl.num_programs(1) - 1)
    def _finalize():
        mean = sum_ref[...] * inv_hw
        var = jnp.maximum(sq_ref[...] * inv_hw - mean * mean, 0.0)
        fb = fb_ref[...].astype(jnp.float32)         # (RT, 2) = [factor, bias]
        scale = fb[:, 0:1] * jax.lax.rsqrt(var + _EPS)
        scale_ref[...] = scale
        shift_ref[...] = fb[:, 1:2] - mean * scale


def _adain_apply_kernel(x_ref, scale_ref, shift_ref, o_ref):
    x = x_ref[...].astype(jnp.float32)
    o_ref[...] = (x * scale_ref[...] + shift_ref[...]).astype(o_ref.dtype)


# --------------------------------------------------------------------------- #
# Wrapper
# --------------------------------------------------------------------------- #
@functools.partial(jax.jit, static_argnames=("hw_block",))
def adain(image, style, hw_block=None):
    """image: (N, C, H, W);  style: (N, 2*C).  Returns (N, C, H, W).

    hw_block: optional static spatial-tile override; forces the HW-split path
    (used for testing and for very large images).
    """
    N, C, H, W = image.shape
    assert style.shape == (N, 2 * C), f"expected style ({N},{2*C}), got {style.shape}"
    HW = H * W
    rows = N * C
    itemsize = jnp.dtype(image.dtype).itemsize
    sub = _sublane(image.dtype)

    x2 = image.reshape(rows, HW)
    # Merged per-row style: column 0 = factor, column 1 = bias (one tiny DMA/step).
    fb = jnp.stack([style[:, :C].reshape(rows),
                    style[:, C:].reshape(rows)], axis=-1)          # (rows, 2)

    row_bytes = HW * itemsize
    use_simple = (hw_block is None
                  and min(rows, sub) * row_bytes <= _MAX_ROWBLOCK_BYTES)

    if use_simple:
        if rows <= sub:
            rt = rows                                # full dim bypasses the 8-rule
        else:
            rt = max(sub, (_TARGET_BLOCK_BYTES // row_bytes) // sub * sub)
            rt = min(rt, rows)
            if pl.cdiv(rows, rt) < 2:                # give v7x's 2nd core some work
                rt = max(sub, _round_up(pl.cdiv(rows, 2), sub))

        out2 = pl.pallas_call(
            functools.partial(_adain_rows_kernel, inv_hw=1.0 / HW),
            out_shape=jax.ShapeDtypeStruct((rows, HW), image.dtype),
            grid=(pl.cdiv(rows, rt),),
            in_specs=[pl.BlockSpec((rt, HW), lambda i: (i, 0)),
                      pl.BlockSpec((rt, 2), lambda i: (i, 0))],
            out_specs=pl.BlockSpec((rt, HW), lambda i: (i, 0)),
            compiler_params=pltpu.CompilerParams(
                dimension_semantics=("parallel",),
                vmem_limit_bytes=_VMEM_LIMIT_BYTES),
        )(x2, fb)
        return out2.reshape(N, C, H, W)

    # ---------------- HW-split path ---------------- #
    rt = min(sub, rows)
    if hw_block is not None:
        ht = hw_block
    else:
        ht = max(_LANE, (_TARGET_BLOCK_BYTES // (rt * itemsize)) // _LANE * _LANE)
    ht = min(ht, _round_up(HW, _LANE))               # always a multiple of 128
    grid = (pl.cdiv(rows, rt), pl.cdiv(HW, ht))

    scale, shift = pl.pallas_call(
        functools.partial(_adain_stats_kernel, hw=HW, ht=ht, inv_hw=1.0 / HW),
        out_shape=(jax.ShapeDtypeStruct((rows, 1), jnp.float32),
                   jax.ShapeDtypeStruct((rows, 1), jnp.float32)),
        grid=grid,
        in_specs=[pl.BlockSpec((rt, ht), lambda i, k: (i, k)),
                  pl.BlockSpec((rt, 2), lambda i, k: (i, 0))],
        out_specs=[pl.BlockSpec((rt, 1), lambda i, k: (i, 0)),
                   pl.BlockSpec((rt, 1), lambda i, k: (i, 0))],
        scratch_shapes=[pltpu.VMEM((rt, 1), jnp.float32),
                        pltpu.VMEM((rt, 1), jnp.float32)],
        compiler_params=pltpu.CompilerParams(
            dimension_semantics=("parallel", "arbitrary"),
            vmem_limit_bytes=_VMEM_LIMIT_BYTES),
    )(x2, fb)

    out2 = pl.pallas_call(
        _adain_apply_kernel,
        out_shape=jax.ShapeDtypeStruct((rows, HW), image.dtype),
        grid=grid,
        in_specs=[pl.BlockSpec((rt, ht), lambda i, k: (i, k)),
                  pl.BlockSpec((rt, 1), lambda i, k: (i, 0)),
                  pl.BlockSpec((rt, 1), lambda i, k: (i, 0))],
        out_specs=pl.BlockSpec((rt, ht), lambda i, k: (i, k)),
        compiler_params=pltpu.CompilerParams(
            dimension_semantics=("parallel", "parallel"),
            vmem_limit_bytes=_VMEM_LIMIT_BYTES),
    )(x2, scale, shift)

    return out2.reshape(N, C, H, W)


def _adain_ref(image, style):
    """Pure-JAX reference mirroring the PyTorch forward."""
    N, C, H, W = image.shape
    factor = style[:, :C].reshape(N, C, 1, 1)
    bias = style[:, C:].reshape(N, C, 1, 1)
    x = image.astype(jnp.float32)
    mean = jnp.mean(x, axis=(2, 3), keepdims=True)
    var = jnp.mean((x - mean) ** 2, axis=(2, 3), keepdims=True)
    norm = (x - mean) / jnp.sqrt(var + _EPS)
    return (norm * factor + bias).astype(image.dtype)


def _check(image, style, **kw):
    out = jax.block_until_ready(adain(image, style, **kw))
    ref = _adain_ref(image, style)
    assert out.shape == image.shape
    err = jnp.max(jnp.abs(out - ref))
    assert jnp.allclose(out, ref, atol=1e-4, rtol=1e-4), f"max abs err {err}"
    return out


if __name__ == "__main__":
    key = jax.random.PRNGKey(0)
    k1, k2 = jax.random.split(key)

    # 1) Main shape (simple full-HW path).
    N, C, H, W = 2, 4, 16, 16
    image = jax.random.normal(k1, (N, C, H, W), dtype=jnp.float32)
    style = jax.random.normal(k2, (N, 2 * C), dtype=jnp.float32)
    _check(image, style)

    # 2) HW not a multiple of 128 and rows < 8 (full-dim blocks, no padding).
    img2 = jax.random.normal(k1, (1, 3, 14, 14), dtype=jnp.float32)
    sty2 = jax.random.normal(k2, (1, 2 * 3), dtype=jnp.float32)
    _check(img2, sty2)

    # 3) Ragged row grid on the simple path (rows=10, rt=8).
    img3 = jax.random.normal(k1, (2, 5, 16, 16), dtype=jnp.float32)
    sty3 = jax.random.normal(k2, (2, 2 * 5), dtype=jnp.float32)
    _check(img3, sty3)

    # 4) Force the HW-split (large-image) path at a small shape: ragged rows
    #    (rows=10) and ragged HW (400 % 128 != 0) exercise the masked reduce.
    img4 = jax.random.normal(k1, (2, 5, 16, 25), dtype=jnp.float32)
    sty4 = jax.random.normal(k2, (2, 2 * 5), dtype=jnp.float32)
    _check(img4, sty4, hw_block=128)

    print("KERNEL_OK")
</pallas_src>

<mosaic_0001>
module attributes {stable_mosaic.version = 11 : i64} {
  func.func @_adain_rows_kernel(%arg0: i32, %arg1: memref<8x256xf32, #tpu.memory_space<vmem>>, %arg2: memref<8x2xf32, #tpu.memory_space<vmem>>, %arg3: memref<8x256xf32, #tpu.memory_space<vmem>>) attributes {dimension_semantics = [#tpu.dimension_semantics<parallel>], iteration_bounds = array<i64: 1>, scalar_prefetch = 0 : i64, scratch_operands = 0 : i64, tpu.core_type = #tpu.core_type<tc>, window_params = [{transform_indices = @transform_0, window_bounds = array<i64: 8, 256>}, {transform_indices = @transform_1, window_bounds = array<i64: 8, 2>}, {transform_indices = @transform_2, window_bounds = array<i64: 8, 256>}]} {
    %c0 = arith.constant 0 : index
    %c0_0 = arith.constant 0 : index
    %0 = vector.load %arg1[%c0, %c0_0] : memref<8x256xf32, #tpu.memory_space<vmem>>, vector<8x256xf32>
    %cst = arith.constant dense<0.000000e+00> : vector<8xf32>
    %1 = vector.multi_reduction <add>, %0, %cst [1] : vector<8x256xf32> to vector<8xf32>
    %2 = vector.shape_cast %1 : vector<8xf32> to vector<8x1xf32>
    %3 = arith.mulf %0, %0 : vector<8x256xf32>
    %cst_1 = arith.constant dense<0.000000e+00> : vector<8xf32>
    %4 = vector.multi_reduction <add>, %3, %cst_1 [1] : vector<8x256xf32> to vector<8xf32>
    %5 = vector.shape_cast %4 : vector<8xf32> to vector<8x1xf32>
    %cst_2 = arith.constant 3.906250e-03 : f32
    %6 = vector.broadcast %cst_2 : f32 to vector<8x1xf32>
    %7 = arith.mulf %2, %6 : vector<8x1xf32>
    %cst_3 = arith.constant 3.906250e-03 : f32
    %8 = vector.broadcast %cst_3 : f32 to vector<8x1xf32>
    %9 = arith.mulf %5, %8 : vector<8x1xf32>
    %10 = arith.mulf %7, %7 : vector<8x1xf32>
    %11 = arith.subf %9, %10 : vector<8x1xf32>
    %cst_4 = arith.constant 0.000000e+00 : f32
    %12 = vector.broadcast %cst_4 : f32 to vector<8x1xf32>
    %13 = arith.maximumf %11, %12 : vector<8x1xf32>
    %c0_5 = arith.constant 0 : index
    %c0_6 = arith.constant 0 : index
    %14 = vector.load %arg2[%c0_5, %c0_6] : memref<8x2xf32, #tpu.memory_space<vmem>>, vector<8x2xf32>
    %15 = vector.extract_strided_slice %14 {offsets = [0, 0], sizes = [8, 1], strides = [1, 1]} : vector<8x2xf32> to vector<8x1xf32>
    %cst_7 = arith.constant 9.99999974E-6 : f32
    %16 = vector.broadcast %cst_7 : f32 to vector<8x1xf32>
    %17 = arith.addf %13, %16 : vector<8x1xf32>
    %18 = math.rsqrt %17 : vector<8x1xf32>
    %19 = arith.mulf %15, %18 : vector<8x1xf32>
    %20 = vector.extract_strided_slice %14 {offsets = [0, 1], sizes = [8, 1], strides = [1, 1]} : vector<8x2xf32> to vector<8x1xf32>
    %21 = arith.mulf %7, %19 : vector<8x1xf32>
    %22 = arith.subf %20, %21 : vector<8x1xf32>
    %23 = vector.broadcast %19 : vector<8x1xf32> to vector<8x256xf32>
    %24 = arith.mulf %0, %23 : vector<8x256xf32>
    %25 = vector.broadcast %22 : vector<8x1xf32> to vector<8x256xf32>
    %26 = arith.addf %24, %25 : vector<8x256xf32>
    %c0_8 = arith.constant 0 : index
    %c0_9 = arith.constant 0 : index
    %27 = vector.load %arg3[%c0_8, %c0_9] : memref<8x256xf32, #tpu.memory_space<vmem>>, vector<8x256xf32>
    tpu.vector_store %arg3[%c0_8, %c0_9], %26 {strides = array<i32>} : memref<8x256xf32, #tpu.memory_space<vmem>>, vector<8x256xf32>,
    return
  }
  func.func @transform_0(%arg0: i32) -> (i32, i32) {
    %c0_i32 = arith.constant 0 : i32
    %c0_i32_0 = arith.constant 0 : i32
    return %arg0, %c0_i32 : i32, i32
  }
  func.func @transform_1(%arg0: i32) -> (i32, i32) {
    %c0_i32 = arith.constant 0 : i32
    %c0_i32_0 = arith.constant 0 : i32
    return %arg0, %c0_i32 : i32, i32
  }
  func.func @transform_2(%arg0: i32) -> (i32, i32) {
    %c0_i32 = arith.constant 0 : i32
    %c0_i32_0 = arith.constant 0 : i32
    return %arg0, %c0_i32 : i32, i32
  }
}

</mosaic_0001>

<bundles_post_ra>
// kernel: adain.1
= control target key start
LH: loop header
LB: loop body
LE: loop exit
PB: predicated region body
PF: predicated region fallthrough
CT: control target
= control target key end

     0   :  { %v63_v6 = vmov 0   ;;  %v64_v15 = vmov 1   ;;  %s65_s14 = smov 1   ;;  %s96_s0 = inlined_call_operand.vmem [shape: f32[8,256], index: 0, kind: input, shape index: {}]   ;;  %s97_s1 = inlined_call_operand.vmem [shape: f32[8,2], index: 1, kind: input, shape index: {}]   ;;  %s98_s2 = inlined_call_operand.vmem [shape: f32[8,256], index: 2, kind: output, shape index: {}]  }
   0x1   :  { %v11_v0 = vld [vmem:[%s96_s0] sm:$0xff]  ;;  %v12_v1 = vld [vmem:[%s96_s0 + $0x8] sm:$0xff]  ;;  %59 = vset.pattern.permute.xlu1 %v63_v6  ;;  %60 = vset.pattern.permute.xlu0 %v64_v15 }
   0x2   :  { %v13_v2 = vadd.f32 %v12_v1, %v11_v0  ;;  %v16_v3 = vmul.f32 %v11_v0, %v11_v0  ;;  %v17_v4 = vmul.f32 %v12_v1, %v12_v1  ;;  %v26_v16 = vld [vmem:[%s97_s1] sm:$0xff] }
   0x4   :  { %14 = vadd.xlane.f32.xlu0 %v13_v2  ;;  %v18_v5 = vadd.f32 %v17_v4, %v16_v3 }
   0x8   :  { %19 = vadd.xlane.f32.xlu0 %v18_v5 }
  0x91   :  { %v15_v7 = vpop.xlane.xlu0 %14 }
  0x92   :  { %v21_v8 = vmul.f32 0.00390625, %v15_v7 }
  0x94   :  { %v23_v10 = vmul.f32 %v21_v8, %v21_v8 }
  0x95   :  { %v20_v9 = vpop.xlane.xlu0 %19 }
  0x96   :  { %v22_v11 = vmul.f32 0.00390625, %v20_v9 }
  0x98   :  { %v24_v12 = vsub.f32 %v22_v11, %v23_v10 }
  0x9a   :  { %v25_v13 = vmax.f32 %v24_v12, 0.0 }
  0x9c   :  { %v27_v14 = vadd.f32 1e-05, %v25_v13 }
  0x9e   :  { %61 = vrsqrt.f32 %v27_v14 }
  0xa8   :  { %v62_v17 = vpop.eup %61 }
  0xa9   :  { %v29_v18 = vmul.f32 %v62_v17, %v26_v16 }
  0xab   :  { %v30_v19 = vmul.f32 %v29_v18, %v21_v8 }
  0xad   :  { %32 = vrot.lane.b32.xlu1 %v30_v19, %s65_s14 }
  0xb1   :  { %38 = vperm.xlu1 %59, %v29_v18  }
 0x11f   :  { %v33_v20 = vpop.permute.xlu1 %32 }
 0x120   :  { %v35_v21 = vsub.f32 %v26_v16, %v33_v20 }
 0x122   :  { %45 = vperm.xlu0 %60, %v35_v21  }
 0x130   :  { %v39_v22 = vpop.permute.xlu1 %38 }
 0x131   :  { %v41_v23 = vmul.f32 %v39_v22, %v11_v0  ;;  %v42_v24 = vmul.f32 %v39_v22, %v12_v1 }
 0x1a1   :  { %v46_v25 = vpop.permute.xlu0 %45 }
 0x1a2   :  { %v48_v26 = vadd.f32 %v46_v25, %v41_v23  ;;  %v49_v27 = vadd.f32 %v46_v25, %v42_v24 }
 0x1a4   :  { %50 = vst [vmem:[%s98_s2] sm:$0xff] %v48_v26  ;;  %51 = vst [vmem:[%s98_s2 + $0x8] sm:$0xff] %v49_v27 }

</bundles_post_ra>
